<compile_context>
chip_gen: v6e
topology: v6e:2x2x1
jax: 0.10.0
libtpu: 0.0.40
codegen_flags: <defaults>
</compile_context>

<pallas_src>
import functools

import jax
import jax.numpy as jnp
from jax.experimental import pallas as pl
from jax.experimental.pallas import tpu as pltpu

# Config.DROPOUT_RATIO is not given in the snippet; use 0.5 (torch default).
DROPOUT_RATIO = 0.5

_LANE = 128
_MAX_TB = 2048  # swept cap; even double-buffered this is tiny vs. any VMEM limit


def _round_up(n, m):
    return ((n + m - 1) // m) * m


def _keep_threshold_u32(keep):
    # Cap at 2**32 - 1: biases keep probability by at most 2**-32 for keep ~ 1 (negligible).
    return jnp.uint32(min(int(round(keep * 4294967296.0)), 0xFFFFFFFF))


def _hw_dropout(h, keep):
    """Inverted dropout from the hardware PRNG (~1 op/element for the bits)."""
    bits = pltpu.prng_random_bits(h.shape)
    if bits.dtype != jnp.uint32:
        bits = pltpu.bitcast(bits, jnp.uint32)
    return jnp.where(bits < _keep_threshold_u32(keep),
                     h * jnp.float32(1.0 / keep), jnp.float32(0.0))


def _hash_dropout(h, keep, gid, seed_u32, salt):
    """Fallback: stateless lowbias32 integer hash (pure VPU ops, portable).

    Mask is unique per (global batch index, feature row, layer salt, seed) and is
    tile-size invariant.
    # TODO(synk): exact torch RNG parity for F.dropout is not reproducible on TPU.
    """
    bits = gid ^ (seed_u32 ^ jnp.uint32(salt))
    bits = bits ^ (bits >> 16)
    bits = bits * jnp.uint32(0x7FEB352D)
    bits = bits ^ (bits >> 15)
    bits = bits * jnp.uint32(0x846CA68B)
    bits = bits ^ (bits >> 16)
    return jnp.where(bits < _keep_threshold_u32(keep),
                     h * jnp.float32(1.0 / keep), jnp.float32(0.0))


def _dropoutnet_kernel(seed_ref, x_ref, w1_ref, b1_ref, w2_ref, b2_ref,
                       w3_ref, b3_ref, o_ref, *, training, p, hw_rng):
    xT = x_ref[...]  # (5, TB) f32 -- batch on lanes

    use_dropout = training and p > 0.0
    keep = 1.0 - p
    gid64 = None
    seed_u32 = None
    if use_dropout:
        if hw_rng:
            # Distinct stream per grid step; mask depends on the tiling (documented,
            # dropout is intentionally not torch-RNG parity).
            pltpu.prng_seed(seed_ref[0], pl.program_id(0))
        else:
            tb = xT.shape[1]
            seed_u32 = seed_ref[0].astype(jnp.uint32) * jnp.uint32(0x9E3779B1)
            # Element id computed ONCE at the larger (64, TB) shape; layer 2 reuses a slice.
            row = jax.lax.broadcasted_iota(jnp.uint32, (64, tb), 0)
            col = jax.lax.broadcasted_iota(jnp.uint32, (64, tb), 1)
            gcol = (pl.program_id(0) * tb).astype(jnp.uint32) + col  # global batch index
            gid64 = gcol * jnp.uint32(64) + row

    # fc1 + relu (+ dropout): (64,5) @ (5,TB) -> (64,TB)
    h = jnp.dot(w1_ref[...], xT, preferred_element_type=jnp.float32) + b1_ref[...]
    h = jnp.maximum(h, 0.0)
    if use_dropout:
        h = _hw_dropout(h, keep) if hw_rng else \
            _hash_dropout(h, keep, gid64, seed_u32, 0x1B873593)

    # fc2 + relu (+ dropout): (32,64) @ (64,TB) -> (32,TB)
    h = jnp.dot(w2_ref[...], h, preferred_element_type=jnp.float32) + b2_ref[...]
    h = jnp.maximum(h, 0.0)
    if use_dropout:
        h = _hw_dropout(h, keep) if hw_rng else \
            _hash_dropout(h, keep, gid64[:32, :], seed_u32, 0xCC9E2D51)

    # fc3: (1,32) @ (32,TB) -> lane-dense (1, TB) output row
    o = jnp.dot(w3_ref[...], h, preferred_element_type=jnp.float32) + b3_ref[...]
    o_ref[...] = o.astype(o_ref.dtype)


def dropoutnet_forward(x, params, *, seed=0, training=False, p=DROPOUT_RATIO, hw_rng=None):
    """x: (B, 5) f32.  params: dict with w1,b1,w2,b2,w3,b3 (weights stored as (in, out))."""
    B, F = x.shape
    assert F == 5
    if hw_rng is None:
        hw_rng = jax.default_backend() == "tpu"

    # Batch tile: multiple of 128 lanes (lane-dense x block and unmasked output stores).
    # Moderate B -> at least 2 grid steps so both v7x TensorCores get work; large B -> big
    # tiles to amortize per-step overhead (single-TC v5e/v6e gain nothing from more steps).
    if B <= _LANE:
        TB = _LANE
    else:
        TB = min(_round_up(-(-B // 2), _LANE), _MAX_TB)
    B_pad = _round_up(B, TB)
    G = B_pad // TB

    # One fused transpose(+tail pad) pass: (B, 5) -> (5, B_pad), batch on the lane axis.
    xT = x.T
    if B_pad != B:
        xT = jnp.pad(xT, ((0, 0), (0, B_pad - B)))

    seed_arr = jnp.asarray([seed], dtype=jnp.int32)
    w1T = params["w1"].T                 # (64, 5)
    b1c = params["b1"].reshape(64, 1)
    w2T = params["w2"].T                 # (32, 64)
    b2c = params["b2"].reshape(32, 1)
    w3r = params["w3"].reshape(1, 32)
    b3c = params["b3"].reshape(1, 1)

    kernel = functools.partial(_dropoutnet_kernel, training=bool(training),
                               p=float(p), hw_rng=bool(hw_rng))
    const = lambda i: (0, 0)

    flops = 2 * B_pad * (5 * 64 + 64 * 32 + 32 * 1)
    bytes_accessed = B_pad * (5 + 1) * 4 + 4 * (5 * 64 + 64 + 64 * 32 + 32 + 32 + 1)

    out = pl.pallas_call(
        kernel,
        grid=(G,),
        out_shape=jax.ShapeDtypeStruct((1, B_pad), jnp.float32),
        in_specs=[
            pl.BlockSpec(memory_space=pltpu.MemorySpace.SMEM),  # seed scalar
            pl.BlockSpec((5, TB), lambda i: (0, i)),            # xT tile (pipelined)
            pl.BlockSpec((64, 5), const),                       # w1^T (VMEM resident)
            pl.BlockSpec((64, 1), const),                       # b1
            pl.BlockSpec((32, 64), const),                      # w2^T
            pl.BlockSpec((32, 1), const),                       # b2
            pl.BlockSpec((1, 32), const),                       # w3 row
            pl.BlockSpec((1, 1), const),                        # b3
        ],
        out_specs=pl.BlockSpec((1, TB), lambda i: (0, i)),
        compiler_params=pltpu.CompilerParams(dimension_semantics=("parallel",)),
        cost_estimate=pl.CostEstimate(flops=flops, transcendentals=0,
                                      bytes_accessed=bytes_accessed),
    )(seed_arr, xT, w1T, b1c, w2T, b2c, w3r, b3c)

    return out.reshape(B_pad, 1)[:B]


def _init_params(key):
    """Deterministic init matching nn.Linear shapes (stored as (in, out))."""
    ks = jax.random.split(key, 6)

    def linear(kw, kb, fan_in, fan_out):
        bound = 1.0 / jnp.sqrt(fan_in)
        w = jax.random.uniform(kw, (fan_in, fan_out), jnp.float32, -bound, bound)
        b = jax.random.uniform(kb, (1, fan_out), jnp.float32, -bound, bound)
        return w, b

    w1, b1 = linear(ks[0], ks[1], 5, 64)
    w2, b2 = linear(ks[2], ks[3], 64, 32)
    w3, b3 = linear(ks[4], ks[5], 32, 1)
    return dict(w1=w1, b1=b1, w2=w2, b2=b2, w3=w3, b3=b3)


def _reference_eval(x, params):
    h = jnp.maximum(x @ params["w1"] + params["b1"], 0.0)
    h = jnp.maximum(h @ params["w2"] + params["b2"], 0.0)
    return h @ params["w3"] + params["b3"]


if __name__ == "__main__":
    key = jax.random.PRNGKey(0)
    k_params, k_x = jax.random.split(key)

    params = _init_params(k_params)

    # Small batch (single 128-lane tile), eval mode: dropout is identity -> matches reference.
    x_small = jax.random.normal(k_x, (8, 5), dtype=jnp.float32)
    out_eval = jax.block_until_ready(dropoutnet_forward(x_small, params, training=False))
    ref_small = _reference_eval(x_small, params)
    assert out_eval.shape == (8, 1)
    assert jnp.allclose(out_eval, ref_small, atol=2e-5, rtol=2e-5)

    # Batch exercising the grid (TB=640, B_pad=1280, 2 tiles) and a ragged tail.
    x_big = jax.random.normal(jax.random.PRNGKey(1), (1037, 5), dtype=jnp.float32)
    out_big = jax.block_until_ready(dropoutnet_forward(x_big, params, training=False))
    ref_big = _reference_eval(x_big, params)
    assert out_big.shape == (1037, 1)
    assert jnp.allclose(out_big, ref_big, atol=2e-5, rtol=2e-5)

    # Training mode, hardware-PRNG dropout (default on TPU; no torch RNG parity by design).
    out_train = jax.block_until_ready(
        dropoutnet_forward(x_small, params, seed=1234, training=True))
    assert out_train.shape == (8, 1)
    assert jnp.all(jnp.isfinite(out_train))

    # Training mode, portable hash fallback path (kept for non-TPU / interpret execution).
    out_train_hash = jax.block_until_ready(
        dropoutnet_forward(x_small, params, seed=1234, training=True, hw_rng=False))
    assert out_train_hash.shape == (8, 1)
    assert jnp.all(jnp.isfinite(out_train_hash))

    print("KERNEL_OK")
</pallas_src>

<mosaic_0001>
module attributes {stable_mosaic.version = 11 : i64} {
  func.func @_dropoutnet_kernel(%arg0: i32, %arg1: memref<1xi32, #tpu.memory_space<smem>>, %arg2: memref<5x128xf32, #tpu.memory_space<vmem>>, %arg3: memref<64x5xf32, #tpu.memory_space<vmem>>, %arg4: memref<64x1xf32, #tpu.memory_space<vmem>>, %arg5: memref<32x64xf32, #tpu.memory_space<vmem>>, %arg6: memref<32x1xf32, #tpu.memory_space<vmem>>, %arg7: memref<1x32xf32, #tpu.memory_space<vmem>>, %arg8: memref<1x1xf32, #tpu.memory_space<vmem>>, %arg9: memref<1x128xf32, #tpu.memory_space<vmem>>) attributes {dimension_semantics = [#tpu.dimension_semantics<parallel>], iteration_bounds = array<i64: 1>, scalar_prefetch = 0 : i64, scratch_operands = 0 : i64, tpu.core_type = #tpu.core_type<tc>, window_params = [{transform_indices = @transform_0, window_bounds = array<i64: 1>}, {transform_indices = @transform_1, window_bounds = array<i64: 5, 128>}, {pipeline_mode = #tpu.pipeline_mode<synchronous>, transform_indices = @transform_2, window_bounds = array<i64: 64, 5>}, {pipeline_mode = #tpu.pipeline_mode<synchronous>, transform_indices = @transform_3, window_bounds = array<i64: 64, 1>}, {pipeline_mode = #tpu.pipeline_mode<synchronous>, transform_indices = @transform_4, window_bounds = array<i64: 32, 64>}, {pipeline_mode = #tpu.pipeline_mode<synchronous>, transform_indices = @transform_5, window_bounds = array<i64: 32, 1>}, {pipeline_mode = #tpu.pipeline_mode<synchronous>, transform_indices = @transform_6, window_bounds = array<i64: 1, 32>}, {pipeline_mode = #tpu.pipeline_mode<synchronous>, transform_indices = @transform_7, window_bounds = array<i64: 1, 1>}, {transform_indices = @transform_8, window_bounds = array<i64: 1, 128>}]} {
    %c0 = arith.constant 0 : index
    %c0_0 = arith.constant 0 : index
    %0 = vector.load %arg2[%c0, %c0_0] : memref<5x128xf32, #tpu.memory_space<vmem>>, vector<5x128xf32>
    %c0_1 = arith.constant 0 : index
    %c0_2 = arith.constant 0 : index
    %1 = vector.load %arg3[%c0_1, %c0_2] : memref<64x5xf32, #tpu.memory_space<vmem>>, vector<64x5xf32>
    %cst = arith.constant dense<0.000000e+00> : vector<64x128xf32>
    %2 = tpu.matmul %1, %0, %cst {dimension_numbers = #tpu.dot_dimension_numbers<[1], [0], [0], [1], [0, 0, 1, 1], [], []>} : vector<64x5xf32>, vector<5x128xf32>, vector<64x128xf32> -> vector<64x128xf32>
    %c0_3 = arith.constant 0 : index
    %c0_4 = arith.constant 0 : index
    %3 = vector.load %arg4[%c0_3, %c0_4] : memref<64x1xf32, #tpu.memory_space<vmem>>, vector<64x1xf32>
    %4 = vector.broadcast %3 : vector<64x1xf32> to vector<64x128xf32>
    %5 = arith.addf %2, %4 : vector<64x128xf32>
    %cst_5 = arith.constant 0.000000e+00 : f32
    %6 = vector.broadcast %cst_5 : f32 to vector<64x128xf32>
    %7 = arith.maximumf %5, %6 : vector<64x128xf32>
    %c0_6 = arith.constant 0 : index
    %c0_7 = arith.constant 0 : index
    %8 = vector.load %arg5[%c0_6, %c0_7] : memref<32x64xf32, #tpu.memory_space<vmem>>, vector<32x64xf32>
    %cst_8 = arith.constant dense<0.000000e+00> : vector<32x128xf32>
    %9 = tpu.matmul %8, %7, %cst_8 {dimension_numbers = #tpu.dot_dimension_numbers<[1], [0], [0], [1], [0, 0, 1, 1], [], []>} : vector<32x64xf32>, vector<64x128xf32>, vector<32x128xf32> -> vector<32x128xf32>
    %c0_9 = arith.constant 0 : index
    %c0_10 = arith.constant 0 : index
    %10 = vector.load %arg6[%c0_9, %c0_10] : memref<32x1xf32, #tpu.memory_space<vmem>>, vector<32x1xf32>
    %11 = vector.broadcast %10 : vector<32x1xf32> to vector<32x128xf32>
    %12 = arith.addf %9, %11 : vector<32x128xf32>
    %cst_11 = arith.constant 0.000000e+00 : f32
    %13 = vector.broadcast %cst_11 : f32 to vector<32x128xf32>
    %14 = arith.maximumf %12, %13 : vector<32x128xf32>
    %c0_12 = arith.constant 0 : index
    %c0_13 = arith.constant 0 : index
    %15 = vector.load %arg7[%c0_12, %c0_13] : memref<1x32xf32, #tpu.memory_space<vmem>>, vector<1x32xf32>
    %cst_14 = arith.constant dense<0.000000e+00> : vector<1x128xf32>
    %16 = tpu.matmul %15, %14, %cst_14 {dimension_numbers = #tpu.dot_dimension_numbers<[1], [0], [0], [1], [0, 0, 1, 1], [], []>} : vector<1x32xf32>, vector<32x128xf32>, vector<1x128xf32> -> vector<1x128xf32>
    %c0_15 = arith.constant 0 : index
    %c0_16 = arith.constant 0 : index
    %17 = vector.load %arg8[%c0_15, %c0_16] : memref<1x1xf32, #tpu.memory_space<vmem>>, vector<1x1xf32>
    %18 = vector.broadcast %17 : vector<1x1xf32> to vector<1x128xf32>
    %19 = arith.addf %16, %18 : vector<1x128xf32>
    %c0_17 = arith.constant 0 : index
    %c0_18 = arith.constant 0 : index
    %20 = vector.load %arg9[%c0_17, %c0_18] : memref<1x128xf32, #tpu.memory_space<vmem>>, vector<1x128xf32>
    tpu.vector_store %arg9[%c0_17, %c0_18], %19 {strides = array<i32>} : memref<1x128xf32, #tpu.memory_space<vmem>>, vector<1x128xf32>,
    return
  }
  func.func @transform_0(%arg0: i32) -> i32 {
    %c0_i32 = arith.constant 0 : i32
    %c0_i32_0 = arith.constant 0 : i32
    return %c0_i32 : i32
  }
  func.func @transform_1(%arg0: i32) -> (i32, i32) {
    %c0_i32 = arith.constant 0 : i32
    %c0_i32_0 = arith.constant 0 : i32
    return %c0_i32, %arg0 : i32, i32
  }
  func.func @transform_2(%arg0: i32) -> (i32, i32) {
    %c0_i32 = arith.constant 0 : i32
    %c0_i32_0 = arith.constant 0 : i32
    %c0_i32_1 = arith.constant 0 : i32
    return %c0_i32, %c0_i32_0 : i32, i32
  }
  func.func @transform_3(%arg0: i32) -> (i32, i32) {
    %c0_i32 = arith.constant 0 : i32
    %c0_i32_0 = arith.constant 0 : i32
    %c0_i32_1 = arith.constant 0 : i32
    return %c0_i32, %c0_i32_0 : i32, i32
  }
  func.func @transform_4(%arg0: i32) -> (i32, i32) {
    %c0_i32 = arith.constant 0 : i32
    %c0_i32_0 = arith.constant 0 : i32
    %c0_i32_1 = arith.constant 0 : i32
    return %c0_i32, %c0_i32_0 : i32, i32
  }
  func.func @transform_5(%arg0: i32) -> (i32, i32) {
    %c0_i32 = arith.constant 0 : i32
    %c0_i32_0 = arith.constant 0 : i32
    %c0_i32_1 = arith.constant 0 : i32
    return %c0_i32, %c0_i32_0 : i32, i32
  }
  func.func @transform_6(%arg0: i32) -> (i32, i32) {
    %c0_i32 = arith.constant 0 : i32
    %c0_i32_0 = arith.constant 0 : i32
    %c0_i32_1 = arith.constant 0 : i32
    return %c0_i32, %c0_i32_0 : i32, i32
  }
  func.func @transform_7(%arg0: i32) -> (i32, i32) {
    %c0_i32 = arith.constant 0 : i32
    %c0_i32_0 = arith.constant 0 : i32
    %c0_i32_1 = arith.constant 0 : i32
    return %c0_i32, %c0_i32_0 : i32, i32
  }
  func.func @transform_8(%arg0: i32) -> (i32, i32) {
    %c0_i32 = arith.constant 0 : i32
    %c0_i32_0 = arith.constant 0 : i32
    return %c0_i32, %arg0 : i32, i32
  }
}

</mosaic_0001>

<bundles_post_ra>
// kernel: tpu_custom_call.1
= control target key start
LH: loop header
LB: loop body
LE: loop exit
PB: predicated region body
PF: predicated region fallthrough
CT: control target
= control target key end

     0   :  { %s722_s0 = inlined_call_operand.<no memory space> [shape: s32[1], index: 0, kind: input, shape index: {}]   ;;  %s723_s1 = inlined_call_operand.vmem [shape: f32[5,128], index: 1, kind: input, shape index: {}]   ;;  %s724_s2 = inlined_call_operand.vmem [shape: f32[64,5], index: 2, kind: input, shape index: {}]   ;;  %s725_s3 = inlined_call_operand.vmem [shape: f32[64,1], index: 3, kind: input, shape index: {}]   ;;  %s726_s4 = inlined_call_operand.vmem [shape: f32[32,64], index: 4, kind: input, shape index: {}]   ;;  %s727_s5 = inlined_call_operand.vmem [shape: f32[32,1], index: 5, kind: input, shape index: {}]   ;;  %s728_s6 = inlined_call_operand.vmem [shape: f32[1,32], index: 6, kind: input, shape index: {}]   ;;  %s729_s7 = inlined_call_operand.<no memory space> [shape: f32[1,1], index: 7, kind: input, shape index: {}]   ;;  %s730_s8 = inlined_call_operand.hbm [shape: f32[1,128], index: 8, kind: output, shape index: {}]  }
   0x1   :  { %v14_v0 = vstv %s729_s7 }
   0x2   :  { %15 = vst [vmem:[#allocation3] sm:$0x1] %v14_v0 }
   0x3   :  { %v33_v1 = vld [vmem:[%s723_s1] sm:$0x1f]  ;;  %vm115_vm0 = vcmask 1044480   ;;  %vm90_vm1 = vcmask 39936   ;;  %v35_v3 = vld [vmem:[%s724_s2 + $0x8] sm:$0xff]  ;;  %v36_v4 = vld [vmem:[%s724_s2 + $0x10] sm:$0xff] }
   0x4   :  { %v34_v2 = vld [vmem:[%s724_s2] sm:$0xff]  ;;  %502 = vmatprep.subr.msk.mxu0 %vm115_vm0, %v33_v1  ;;  %v577_v5 = vmov 0   ;;  %v49_v6 = vld [vmem:[%s725_s3 + $0x38] sm:$0xff]  ;;  %v47_v7 = vld [vmem:[%s725_s3 + $0x28] sm:$0xff] }
   0x5   :  { %504 = vmatprep.mubr.msk.f32.mxu0 %vm90_vm1, %v34_v2  ;;  %503 = vmatpush3.msk.msra.mxu0 %vm115_vm0, %v33_v1  ;;  %v37_v8 = vld [vmem:[%s724_s2 + $0x18] sm:$0xff]  ;;  %v38_v9 = vld [vmem:[%s724_s2 + $0x20] sm:$0xff]  ;;  %v48_v10 = vld [vmem:[%s725_s3 + $0x30] sm:$0xff] }
   0x6   :  { %553 = vset.pattern.permute.xlu0 %v577_v5  ;;  %505 = vmatmul.mubr.msk.f32.vlgmr.msra.gmra.mxu0 %vm90_vm1, %v35_v3  ;;  %v46_v11 = vld [vmem:[%s725_s3 + $0x20] sm:$0xff] }
   0x7   :  { %554 = vset.pattern.permute.xlu1 %v577_v5  ;;  %507 = vmatprep.mubr.msk.f32.mxu0 %vm90_vm1, %v36_v4 }
   0x8   :  { %87 = vperm.xlu0 %553, %v49_v6   ;;  %77 = vperm.xlu1 %554, %v47_v7  }
   0xa   :  { %508 = vmatmul.mubr.msk.f32.gmra.mxu0 %vm90_vm1, %v37_v8 }
   0xb   :  { %16 = vsyncpa [#allocation5], 0  ;;  %510 = vmatprep.mubr.msk.f32.mxu0 %vm90_vm1, %v38_v9  ;;  %v39_v12 = vld [vmem:[%s724_s2 + $0x28] sm:$0xff]  ;;  %v40_v13 = vld [vmem:[%s724_s2 + $0x30] sm:$0xff]  ;;  %vm260_vm2 = vcmask 523264   ;;  %v578_v60 = vmov 0.0  }
   0xc   :  { %82 = vperm.xlu0 %553, %v48_v10   ;;  %72 = vperm.xlu1 %554, %v46_v11   ;;  %v45_v14 = vld [vmem:[%s725_s3 + $0x18] sm:$0xff]  ;;  %v44_v15 = vld [vmem:[%s725_s3 + $0x10] sm:$0xff]  ;;  %v43_v17 = vld [vmem:[%s725_s3 + $0x8] sm:$0xff]  ;;  %vm579_vm3 = vmmov 0   ;;  %vm373_vm4 = vcmask 261120   ;;  %s580_s26 = smov [#allocation4]  }
   0xd   :  { %v41_v16 = vld [vmem:[%s724_s2 + $0x38] sm:$0xff]  ;;  %v42_v18 = vld [vmem:[%s725_s3] sm:$0xff]  ;;  %v238_v20 = vld [vmem:[%s727_s5 + $0x10] sm:$0xff]  ;;  %538 = vmatprep.subr.mxu0 %v578_v60  ;;  %s454_s27 = sshll.u32 %s580_s26, 4  ;;  %s455_s27 = int_to_ptr.vmem [resolvable:$true] %s454_s27 }
   0xe   :  { %511 = vmatmul.mubr.msk.f32.gmra.mxu0 %vm90_vm1, %v39_v12  ;;  %v239_v19 = vld [vmem:[%s727_s5 + $0x18] sm:$0xff]  ;;  %v237_v21 = vld [vmem:[%s727_s5 + $0x8] sm:$0xff]  ;;  %v236_v22 = vld [vmem:[%s727_s5] sm:$0xff]  ;;  %s555_s28 = scalar_lea.vmem %s455_s27, 16  ;;  %s559_s29 = scalar_lea.vmem %s455_s27, 32 }
   0xf   :  { %513 = vmatprep.mubr.msk.f32.mxu0 %vm90_vm1, %v40_v13  ;;  %v363_v23 = vld [vmem:[#allocation3] sm:$0x1]  ;;  %v233_v57 = vld [vmem:[%s726_s4 + $0x8] sm:$0xff]  ;;  %v234_v58 = vld [vmem:[%s726_s4 + $0x10] sm:$0xff]  ;;  %p556_p0 = scmp.ne.s32.totalorder %s455_s27, %s555_s28  ;;  %p560_p1 = scmp.lt.s32.totalorder %s455_s27, %s455_s27 }
  0x10   :  { %67 = vperm.xlu0 %553, %v45_v14   ;;  %62 = vperm.xlu1 %554, %v44_v15   ;;  %v232_v24 = vld [vmem:[%s726_s4] sm:$0xff]  ;;  %v235_v59 = vld [vmem:[%s726_s4 + $0x18] sm:$0xff]  ;;  %v369_v14 = vlaneseq  ;;  %p561_p2 = scmp.lt.s32.totalorder %s559_s29, %s555_s28 }
  0x11   :  { %532 = vmatprep.mubr.msk.f32.mxu1 %vm260_vm2, %v232_v24  ;;  %v362_v13 = vld [vmem:[%s728_s6] sm:$0x1] }
  0x12   :  { %514 = vmatmul.mubr.msk.f32.gmra.mxu0 %vm90_vm1, %v41_v16  ;;  %v370_v15 = vshrl.u32 %v369_v14, 7  ;;  %p562_p3 = por %p561_p2, %p560_p1 }
  0x13   :  { %546 = vmatprep.mubr.msk.f32.mxu0 %vm579_vm3, %v578_v60 }
  0x14   :  { %57 = vperm.xlu0 %553, %v43_v17   ;;  %52 = vperm.xlu1 %554, %v42_v18   ;;  %v371_v16 = vsub.s32 0, %v370_v15  ;;  %p563_p4 = pnand %p562_p3, %p556_p0 }
  0x18   :  { %257 = vperm.xlu0 %553, %v239_v19   ;;  %252 = vperm.xlu1 %554, %v238_v20  }
  0x1c   :  { %247 = vperm.xlu0 %553, %v237_v21   ;;  %242 = vperm.xlu1 %554, %v236_v22  }
  0x20   :  { %366 = vperm.xlu0 %553, %v363_v23  }
  0x83   :  { %v88_v27 = vpop.permute.xlu0 %87  ;;  %v78_v28 = vpop.permute.xlu1 %77 }
  0x87   :  { %v83_v32 = vpop.permute.xlu0 %82  ;;  %v73_v33 = vpop.permute.xlu1 %72 }
  0x8b   :  { %v68_v41 = vpop.permute.xlu0 %67  ;;  %v63_v42 = vpop.permute.xlu1 %62 }
  0x8f   :  { %v58_v49 = vpop.permute.xlu0 %57  ;;  %v53_v50 = vpop.permute.xlu1 %52 }
  0x93   :  { %v258_v61 = vpop.permute.xlu0 %257  ;;  %v253_v63 = vpop.permute.xlu1 %252 }
  0x97   :  { %v248_v3 = vpop.permute.xlu0 %247  ;;  %v243_v8 = vpop.permute.xlu1 %242 }
  0x9b   :  { %v367_v17 = vpop.permute.xlu0 %366 }
  0x9c   :  { %v372_v18 = vrot.slane %v367_v17, %v371_v16 }
  0xc6   :  { %v506_v25 = vpop.f32.mrf.mxu0 }
  0xc7   :  { %v191_v51 = vadd.f32 %v506_v25, %v58_v49 }
  0xc8   :  { %v185_v26 = vpop.f32.mrf.mxu0 }
  0xc9   :  { %v186_v53 = vadd.f32 %v185_v26, %v53_v50  ;;  %v225_v55 = vmax.f32 %v191_v51, 0.0 }
  0xca   :  { %v509_v29 = vpop.f32.mrf.mxu0 }
  0xcb   :  { %v201_v45 = vadd.f32 %v509_v29, %v68_v41  ;;  %v224_v56 = vmax.f32 %v186_v53, 0.0 }
  0xcc   :  { %v195_v30 = vpop.f32.mrf.mxu0 }
  0xcd   :  { %v196_v47 = vadd.f32 %v195_v30, %v63_v42  ;;  %v227_v52 = vmax.f32 %v201_v45, 0.0 }
  0xce   :  { %v512_v31 = vpop.f32.mrf.mxu0 }
  0xcf   :  { %v211_v38 = vadd.f32 %v512_v31, %v78_v28  ;;  %v226_v54 = vmax.f32 %v196_v47, 0.0 }
  0xd0   :  { %v205_v34 = vpop.f32.mrf.mxu0 }
  0xd1   :  { %v206_v43 = vadd.f32 %v205_v34, %v73_v33  ;;  %v229_v46 = vmax.f32 %v211_v38, 0.0 }
  0xd2   :  { %v515_v35 = vpop.f32.mrf.mxu0 }
  0xd3   :  { %v221_v36 = vadd.f32 %v515_v35, %v88_v27  ;;  %v228_v48 = vmax.f32 %v206_v43, 0.0 }
  0xd4   :  { %v215_v37 = vpop.f32.mrf.mxu0 }
  0xd5   :  { %v231_v39 = vmax.f32 %v221_v36, 0.0  ;;  %v216_v40 = vadd.f32 %v215_v37, %v83_v32 }
  0xd7   :  { %v230_v44 = vmax.f32 %v216_v40, 0.0  ;;  %516 = vmatprep.subr.mxu1 %v231_v39 }
  0xd8   :  { %517 = vmatpush3.msra.mxu1 %v231_v39 }
  0xd9   :  { %518 = vmatprep.subr.mxu1 %v230_v44 }
  0xda   :  { %519 = vmatpush3.msra.mxu1 %v230_v44 }
  0xdb   :  { %520 = vmatprep.subr.mxu1 %v229_v46 }
  0xdc   :  { %521 = vmatpush3.msra.mxu1 %v229_v46 }
  0xdd   :  { %522 = vmatprep.subr.mxu1 %v228_v48 }
  0xde   :  { %523 = vmatpush3.msra.mxu1 %v228_v48 }
  0xdf   :  { %524 = vmatprep.subr.mxu1 %v227_v52 }
  0xe0   :  { %525 = vmatpush3.msra.mxu1 %v227_v52 }
  0xe1   :  { %526 = vmatprep.subr.mxu1 %v226_v54 }
  0xe2   :  { %527 = vmatpush3.msra.mxu1 %v226_v54 }
  0xe3   :  { %528 = vmatprep.subr.mxu1 %v225_v55 }
  0xe4   :  { %529 = vmatpush3.msra.mxu1 %v225_v55 }
  0xe5   :  { %530 = vmatprep.subr.mxu1 %v224_v56 }
  0xe6   :  { %531 = vmatpush3.msra.mxu1 %v224_v56 }
  0xe7   :  { %533 = vmatmul.mubr.msk.f32.vlgmr.msra.gmra.mxu1 %vm260_vm2, %v233_v57 }
  0xe8   :  { %535 = vmatprep.mubr.msk.f32.mxu1 %vm260_vm2, %v234_v58 }
  0xeb   :  { %536 = vmatmul.mubr.msk.f32.gmra.mxu1 %vm260_vm2, %v235_v59 }
 0x1a7   :  { %v534_v62 = vpop.f32.mrf.mxu1 }
 0x1a8   :  { %v345_v5 = vadd.f32 %v534_v62, %v248_v3 }
 0x1a9   :  { %v339_v0 = vpop.f32.mrf.mxu1 }
 0x1aa   :  { %v340_v9 = vadd.f32 %v339_v0, %v243_v8  ;;  %v359_v11 = vmax.f32 %v345_v5, 0.0 }
 0x1ab   :  { %v537_v1 = vpop.f32.mrf.mxu1 }
 0x1ac   :  { %v355_v2 = vadd.f32 %v537_v1, %v258_v61  ;;  %v358_v12 = vmax.f32 %v340_v9, 0.0 }
 0x1ad   :  { %v349_v4 = vpop.f32.mrf.mxu1 }
 0x1ae   :  { %v361_v6 = vmax.f32 %v355_v2, 0.0  ;;  %v350_v7 = vadd.f32 %v349_v4, %v253_v63 }
 0x1b0   :  { %v360_v10 = vmax.f32 %v350_v7, 0.0  ;;  %539 = vmatpush3.msra.mxu0 %v361_v6 }
 0x1b1   :  { %540 = vmatprep.subr.mxu0 %v578_v60 }
 0x1b2   :  { %541 = vmatpush3.msra.mxu0 %v360_v10 }
 0x1b3   :  { %542 = vmatprep.subr.mxu0 %v578_v60 }
 0x1b4   :  { %543 = vmatpush3.msra.mxu0 %v359_v11 }
 0x1b5   :  { %544 = vmatprep.subr.mxu0 %v578_v60 }
 0x1b6   :  { %545 = vmatpush3.msra.mxu0 %v358_v12 }
 0x1b7   :  { %547 = vmatmul.mubr.msk.f32.vlgmr.msra.gmra.mxu0 %vm373_vm4, %v362_v13 }
 0x277   :  { %v443_v19 = vpop.f32.mrf.mxu0 }
 0x278   :  { %v444_v20 = vadd.f32 %v443_v19, %v372_v18 }
 0x279   :  { %v548_v21 = vpop.f32.mrf.mxu0 }
 0x27a   :  { %447 = vst [vmem:[#allocation4] sm:$0x1] %v444_v20 }
 0x27b   :  { %566 = shalt.err (!%p563_p4)
}
 0x27c   :  { %457 = dma.vmem_to_hbm [thread:$0]  %s455_s27, 16, %s730_s8, [#allocation5]  }
 0x27d   :  { %575 = dma.done.wait [#allocation5], 16  }
 0x27e   :  { %576 = vsyncadd [#allocation5], 4294967280 }
 0x27f   :  { %461 = vsyncpa [#allocation5], 1 }

</bundles_post_ra>
